<compile_context>
chip_gen: v7x
topology: tpu7x:2x2x1
jax: 0.10.0
libtpu: 0.0.40
codegen_flags: <defaults>
</compile_context>

<pallas_src>
import functools

import jax
import jax.numpy as jnp
from jax import lax
from jax.experimental import pallas as pl
from jax.experimental.pallas import tpu as pltpu


def _lstm_fc_kernel(x_ref,       # (T*B, I)   time-major flattened sequence
                    coords_ref,  # (B, 2)
                    wih_ref,     # (I, 4H)
                    whh_ref,     # (H, 4H)
                    b_ref,       # (1, 4H)    (= b_ih + b_hh)
                    wfc_h_ref,   # (H, Opad)
                    wfc_c_ref,   # (2, Opad)
                    bfc_ref,     # (1, Opad)
                    out_ref):    # (B, Opad)
    B = coords_ref.shape[0]
    H = whh_ref.shape[0]
    T = x_ref.shape[0] // B

    # Hoisted input projection: one MXU push covering every timestep, with the
    # fused bias folded in once (removed from the per-step critical path).
    xw = (jnp.dot(x_ref[...], wih_ref[...], preferred_element_type=jnp.float32)
          + b_ref[...])                                    # (T*B, 4H)

    # Recurrent weight stays resident in vregs across the unrolled loop.
    whh = whh_ref[...]                                     # (H, 4H)

    h = jnp.zeros((B, H), jnp.float32)                     # PyTorch default h0
    c = jnp.zeros((B, H), jnp.float32)                     # PyTorch default c0

    # Fully unrolled recurrence (T small & static): only h @ W_hh + gate math
    # remain on the serialized chain; xw rows are contiguous static slices.
    for t in range(T):
        gates = xw[t * B:(t + 1) * B, :] + jnp.dot(
            h, whh, preferred_element_type=jnp.float32)    # (B, 4H)
        i_g = jax.nn.sigmoid(gates[:, 0 * H:1 * H])
        f_g = jax.nn.sigmoid(gates[:, 1 * H:2 * H])
        g_g = jnp.tanh(gates[:, 2 * H:3 * H])
        o_g = jax.nn.sigmoid(gates[:, 3 * H:4 * H])
        c = f_g * c + i_g * g_g
        h = o_g * jnp.tanh(c)

    # fc(cat([h_T, coords], dim=1)) computed as a split matmul (identical
    # math, avoids an in-kernel concat of odd lane widths).  Output columns
    # are lane-padded to Opad for a dense store.
    out = (jnp.dot(h, wfc_h_ref[...], preferred_element_type=jnp.float32)
           + jnp.dot(coords_ref[...], wfc_c_ref[...],
                     preferred_element_type=jnp.float32)
           + bfc_ref[...])
    out_ref[...] = out.astype(out_ref.dtype)


@functools.partial(jax.jit, static_argnames=("hidden_size", "output_size"))
def my_model_forward(x_seq, x_coords, params, *, hidden_size, output_size):
    """x_seq: (B, T, I) f32, x_coords: (B, 2) f32 -> (B, output_size) f32."""
    B, T, I = x_seq.shape
    H = hidden_size
    O = output_size
    O_pad = ((O + 127) // 128) * 128

    # Time-major flatten so the kernel takes contiguous static row slices of
    # the hoisted projection (xw[t*B:(t+1)*B]).  Tiny relayout at these shapes.
    x_tm2d = jnp.transpose(x_seq, (1, 0, 2)).reshape(T * B, I)

    # PyTorch stores weight_ih as (4H, I) etc.; transpose for x @ W layout.
    wih = params["weight_ih"].T                           # (I, 4H)
    whh = params["weight_hh"].T                           # (H, 4H)
    b = (params["bias_ih"] + params["bias_hh"]).reshape(1, 4 * H)

    # FC weights split at the concat boundary and lane-padded to O_pad so the
    # kernel's output store is lane-dense; padded columns are zero.
    wfc = params["fc_weight"].T                           # (H+2, O)
    wfc_pad = jnp.zeros((H + 2, O_pad), jnp.float32).at[:, :O].set(wfc)
    wfc_h = wfc_pad[:H, :]                                # (H, O_pad)
    wfc_c = wfc_pad[H:, :]                                # (2, O_pad)
    bfc = jnp.zeros((1, O_pad), jnp.float32).at[:, :O].set(
        params["fc_bias"].reshape(1, O))

    vmem = pl.BlockSpec(memory_space=pltpu.MemorySpace.VMEM)
    out_pad = pl.pallas_call(
        _lstm_fc_kernel,
        out_shape=jax.ShapeDtypeStruct((B, O_pad), jnp.float32),
        in_specs=[vmem] * 8,
        out_specs=vmem,
        # TODO(synk): set pltpu.CompilerParams(vmem_limit_bytes=...) once
        # shapes are production-sized (and add a T grid for streaming).
    )(x_tm2d, x_coords, wih, whh, b, wfc_h, wfc_c, bfc)
    return out_pad[:, :O]


def init_params(key, input_size, hidden_size, output_size):
    """Deterministic init mimicking PyTorch's U(-1/sqrt(H), 1/sqrt(H))."""
    H, I, O = hidden_size, input_size, output_size
    k = 1.0 / jnp.sqrt(jnp.float32(H))
    keys = jax.random.split(key, 6)
    u = lambda kk, shape: jax.random.uniform(kk, shape, jnp.float32, -k, k)
    return {
        "weight_ih": u(keys[0], (4 * H, I)),
        "weight_hh": u(keys[1], (4 * H, H)),
        "bias_ih": u(keys[2], (4 * H,)),
        "bias_hh": u(keys[3], (4 * H,)),
        "fc_weight": u(keys[4], (O, H + 2)),
        "fc_bias": u(keys[5], (O,)),
    }


def _reference_forward(x_seq, x_coords, params):
    """Pure-JAX reference of the PyTorch forward (for sanity checking)."""
    H = params["weight_hh"].shape[1]
    wih, whh = params["weight_ih"], params["weight_hh"]
    b = params["bias_ih"] + params["bias_hh"]

    def cell(carry, x_t):
        h, c = carry
        gates = x_t @ wih.T + h @ whh.T + b
        i = jax.nn.sigmoid(gates[:, 0 * H:1 * H])
        f = jax.nn.sigmoid(gates[:, 1 * H:2 * H])
        g = jnp.tanh(gates[:, 2 * H:3 * H])
        o = jax.nn.sigmoid(gates[:, 3 * H:4 * H])
        c_new = f * c + i * g
        h_new = o * jnp.tanh(c_new)
        return (h_new, c_new), None

    B = x_seq.shape[0]
    h0 = jnp.zeros((B, H), jnp.float32)
    c0 = jnp.zeros((B, H), jnp.float32)
    (h_last, _), _ = lax.scan(cell, (h0, c0), jnp.transpose(x_seq, (1, 0, 2)))
    merged = jnp.concatenate([h_last, x_coords], axis=1)
    return merged @ params["fc_weight"].T + params["fc_bias"]


if __name__ == "__main__":
    B, T, INPUT, HIDDEN, OUTPUT = 2, 8, 4, 32, 3

    key = jax.random.PRNGKey(0)
    k_x, k_c, k_p = jax.random.split(key, 3)
    x_seq = jax.random.normal(k_x, (B, T, INPUT), jnp.float32)
    x_coords = jax.random.normal(k_c, (B, 2), jnp.float32)
    params = init_params(k_p, INPUT, HIDDEN, OUTPUT)

    out = my_model_forward(x_seq, x_coords, params,
                           hidden_size=HIDDEN, output_size=OUTPUT)
    out = jax.block_until_ready(out)

    ref = _reference_forward(x_seq, x_coords, params)
    assert out.shape == (B, OUTPUT)
    assert jnp.allclose(out, ref, atol=1e-4, rtol=1e-4), (out, ref)

    print("KERNEL_OK")
</pallas_src>

<mosaic_0001>
module attributes {stable_mosaic.version = 11 : i64} {
  func.func @_lstm_fc_kernel(%arg0: memref<16x4xf32, #tpu.memory_space<vmem>>, %arg1: memref<2x2xf32, #tpu.memory_space<vmem>>, %arg2: memref<4x128xf32, #tpu.memory_space<vmem>>, %arg3: memref<32x128xf32, #tpu.memory_space<vmem>>, %arg4: memref<1x128xf32, #tpu.memory_space<vmem>>, %arg5: memref<32x128xf32, #tpu.memory_space<vmem>>, %arg6: memref<2x128xf32, #tpu.memory_space<vmem>>, %arg7: memref<1x128xf32, #tpu.memory_space<vmem>>, %arg8: memref<2x128xf32, #tpu.memory_space<vmem>>) attributes {dimension_semantics = [], scalar_prefetch = 0 : i64, scratch_operands = 0 : i64, tpu.core_type = #tpu.core_type<tc>} {
    %c0 = arith.constant 0 : index
    %c0_0 = arith.constant 0 : index
    %0 = vector.load %arg0[%c0, %c0_0] : memref<16x4xf32, #tpu.memory_space<vmem>>, vector<16x4xf32>
    %c0_1 = arith.constant 0 : index
    %c0_2 = arith.constant 0 : index
    %1 = vector.load %arg2[%c0_1, %c0_2] : memref<4x128xf32, #tpu.memory_space<vmem>>, vector<4x128xf32>
    %cst = arith.constant dense<0.000000e+00> : vector<16x128xf32>
    %2 = tpu.matmul %0, %1, %cst {dimension_numbers = #tpu.dot_dimension_numbers<[1], [0], [0], [1], [0, 0, 1, 1], [], []>} : vector<16x4xf32>, vector<4x128xf32>, vector<16x128xf32> -> vector<16x128xf32>
    %c0_3 = arith.constant 0 : index
    %c0_4 = arith.constant 0 : index
    %3 = vector.load %arg4[%c0_3, %c0_4] : memref<1x128xf32, #tpu.memory_space<vmem>>, vector<1x128xf32>
    %4 = vector.broadcast %3 : vector<1x128xf32> to vector<16x128xf32>
    %5 = arith.addf %2, %4 : vector<16x128xf32>
    %c0_5 = arith.constant 0 : index
    %c0_6 = arith.constant 0 : index
    %6 = vector.load %arg3[%c0_5, %c0_6] : memref<32x128xf32, #tpu.memory_space<vmem>>, vector<32x128xf32>
    %cst_7 = arith.constant 0.000000e+00 : f32
    %7 = vector.broadcast %cst_7 : f32 to vector<2x32xf32>
    %cst_8 = arith.constant 0.000000e+00 : f32
    %8 = vector.broadcast %cst_8 : f32 to vector<2x32xf32>
    %9 = vector.extract_strided_slice %5 {offsets = [0, 0], sizes = [2, 128], strides = [1, 1]} : vector<16x128xf32> to vector<2x128xf32>
    %cst_9 = arith.constant dense<0.000000e+00> : vector<2x128xf32>
    %10 = tpu.matmul %7, %6, %cst_9 {dimension_numbers = #tpu.dot_dimension_numbers<[1], [0], [0], [1], [0, 0, 1, 1], [], []>} : vector<2x32xf32>, vector<32x128xf32>, vector<2x128xf32> -> vector<2x128xf32>
    %11 = arith.addf %9, %10 : vector<2x128xf32>
    %12 = vector.extract_strided_slice %11 {offsets = [0, 0], sizes = [2, 32], strides = [1, 1]} : vector<2x128xf32> to vector<2x32xf32>
    %13 = arith.negf %12 : vector<2x32xf32>
    %14 = math.exp %13 : vector<2x32xf32>
    %cst_10 = arith.constant 1.000000e+00 : f32
    %15 = vector.broadcast %cst_10 : f32 to vector<2x32xf32>
    %16 = arith.addf %15, %14 : vector<2x32xf32>
    %17 = arith.divf %15, %16 : vector<2x32xf32>
    %18 = vector.extract_strided_slice %11 {offsets = [0, 32], sizes = [2, 32], strides = [1, 1]} : vector<2x128xf32> to vector<2x32xf32>
    %19 = arith.negf %18 : vector<2x32xf32>
    %20 = math.exp %19 : vector<2x32xf32>
    %cst_11 = arith.constant 1.000000e+00 : f32
    %21 = vector.broadcast %cst_11 : f32 to vector<2x32xf32>
    %22 = arith.addf %21, %20 : vector<2x32xf32>
    %23 = arith.divf %21, %22 : vector<2x32xf32>
    %24 = vector.extract_strided_slice %11 {offsets = [0, 64], sizes = [2, 32], strides = [1, 1]} : vector<2x128xf32> to vector<2x32xf32>
    %25 = math.tanh %24 : vector<2x32xf32>
    %26 = vector.extract_strided_slice %11 {offsets = [0, 96], sizes = [2, 32], strides = [1, 1]} : vector<2x128xf32> to vector<2x32xf32>
    %27 = arith.negf %26 : vector<2x32xf32>
    %28 = math.exp %27 : vector<2x32xf32>
    %cst_12 = arith.constant 1.000000e+00 : f32
    %29 = vector.broadcast %cst_12 : f32 to vector<2x32xf32>
    %30 = arith.addf %29, %28 : vector<2x32xf32>
    %31 = arith.divf %29, %30 : vector<2x32xf32>
    %32 = arith.mulf %23, %8 : vector<2x32xf32>
    %33 = arith.mulf %17, %25 : vector<2x32xf32>
    %34 = arith.addf %32, %33 : vector<2x32xf32>
    %35 = math.tanh %34 : vector<2x32xf32>
    %36 = arith.mulf %31, %35 : vector<2x32xf32>
    %37 = vector.extract_strided_slice %5 {offsets = [2, 0], sizes = [2, 128], strides = [1, 1]} : vector<16x128xf32> to vector<2x128xf32>
    %cst_13 = arith.constant dense<0.000000e+00> : vector<2x128xf32>
    %38 = tpu.matmul %36, %6, %cst_13 {dimension_numbers = #tpu.dot_dimension_numbers<[1], [0], [0], [1], [0, 0, 1, 1], [], []>} : vector<2x32xf32>, vector<32x128xf32>, vector<2x128xf32> -> vector<2x128xf32>
    %39 = arith.addf %37, %38 : vector<2x128xf32>
    %40 = vector.extract_strided_slice %39 {offsets = [0, 0], sizes = [2, 32], strides = [1, 1]} : vector<2x128xf32> to vector<2x32xf32>
    %41 = arith.negf %40 : vector<2x32xf32>
    %42 = math.exp %41 : vector<2x32xf32>
    %cst_14 = arith.constant 1.000000e+00 : f32
    %43 = vector.broadcast %cst_14 : f32 to vector<2x32xf32>
    %44 = arith.addf %43, %42 : vector<2x32xf32>
    %45 = arith.divf %43, %44 : vector<2x32xf32>
    %46 = vector.extract_strided_slice %39 {offsets = [0, 32], sizes = [2, 32], strides = [1, 1]} : vector<2x128xf32> to vector<2x32xf32>
    %47 = arith.negf %46 : vector<2x32xf32>
    %48 = math.exp %47 : vector<2x32xf32>
    %cst_15 = arith.constant 1.000000e+00 : f32
    %49 = vector.broadcast %cst_15 : f32 to vector<2x32xf32>
    %50 = arith.addf %49, %48 : vector<2x32xf32>
    %51 = arith.divf %49, %50 : vector<2x32xf32>
    %52 = vector.extract_strided_slice %39 {offsets = [0, 64], sizes = [2, 32], strides = [1, 1]} : vector<2x128xf32> to vector<2x32xf32>
    %53 = math.tanh %52 : vector<2x32xf32>
    %54 = vector.extract_strided_slice %39 {offsets = [0, 96], sizes = [2, 32], strides = [1, 1]} : vector<2x128xf32> to vector<2x32xf32>
    %55 = arith.negf %54 : vector<2x32xf32>
    %56 = math.exp %55 : vector<2x32xf32>
    %cst_16 = arith.constant 1.000000e+00 : f32
    %57 = vector.broadcast %cst_16 : f32 to vector<2x32xf32>
    %58 = arith.addf %57, %56 : vector<2x32xf32>
    %59 = arith.divf %57, %58 : vector<2x32xf32>
    %60 = arith.mulf %51, %34 : vector<2x32xf32>
    %61 = arith.mulf %45, %53 : vector<2x32xf32>
    %62 = arith.addf %60, %61 : vector<2x32xf32>
    %63 = math.tanh %62 : vector<2x32xf32>
    %64 = arith.mulf %59, %63 : vector<2x32xf32>
    %65 = vector.extract_strided_slice %5 {offsets = [4, 0], sizes = [2, 128], strides = [1, 1]} : vector<16x128xf32> to vector<2x128xf32>
    %cst_17 = arith.constant dense<0.000000e+00> : vector<2x128xf32>
    %66 = tpu.matmul %64, %6, %cst_17 {dimension_numbers = #tpu.dot_dimension_numbers<[1], [0], [0], [1], [0, 0, 1, 1], [], []>} : vector<2x32xf32>, vector<32x128xf32>, vector<2x128xf32> -> vector<2x128xf32>
    %67 = arith.addf %65, %66 : vector<2x128xf32>
    %68 = vector.extract_strided_slice %67 {offsets = [0, 0], sizes = [2, 32], strides = [1, 1]} : vector<2x128xf32> to vector<2x32xf32>
    %69 = arith.negf %68 : vector<2x32xf32>
    %70 = math.exp %69 : vector<2x32xf32>
    %cst_18 = arith.constant 1.000000e+00 : f32
    %71 = vector.broadcast %cst_18 : f32 to vector<2x32xf32>
    %72 = arith.addf %71, %70 : vector<2x32xf32>
    %73 = arith.divf %71, %72 : vector<2x32xf32>
    %74 = vector.extract_strided_slice %67 {offsets = [0, 32], sizes = [2, 32], strides = [1, 1]} : vector<2x128xf32> to vector<2x32xf32>
    %75 = arith.negf %74 : vector<2x32xf32>
    %76 = math.exp %75 : vector<2x32xf32>
    %cst_19 = arith.constant 1.000000e+00 : f32
    %77 = vector.broadcast %cst_19 : f32 to vector<2x32xf32>
    %78 = arith.addf %77, %76 : vector<2x32xf32>
    %79 = arith.divf %77, %78 : vector<2x32xf32>
    %80 = vector.extract_strided_slice %67 {offsets = [0, 64], sizes = [2, 32], strides = [1, 1]} : vector<2x128xf32> to vector<2x32xf32>
    %81 = math.tanh %80 : vector<2x32xf32>
    %82 = vector.extract_strided_slice %67 {offsets = [0, 96], sizes = [2, 32], strides = [1, 1]} : vector<2x128xf32> to vector<2x32xf32>
    %83 = arith.negf %82 : vector<2x32xf32>
    %84 = math.exp %83 : vector<2x32xf32>
    %cst_20 = arith.constant 1.000000e+00 : f32
    %85 = vector.broadcast %cst_20 : f32 to vector<2x32xf32>
    %86 = arith.addf %85, %84 : vector<2x32xf32>
    %87 = arith.divf %85, %86 : vector<2x32xf32>
    %88 = arith.mulf %79, %62 : vector<2x32xf32>
    %89 = arith.mulf %73, %81 : vector<2x32xf32>
    %90 = arith.addf %88, %89 : vector<2x32xf32>
    %91 = math.tanh %90 : vector<2x32xf32>
    %92 = arith.mulf %87, %91 : vector<2x32xf32>
    %93 = vector.extract_strided_slice %5 {offsets = [6, 0], sizes = [2, 128], strides = [1, 1]} : vector<16x128xf32> to vector<2x128xf32>
    %cst_21 = arith.constant dense<0.000000e+00> : vector<2x128xf32>
    %94 = tpu.matmul %92, %6, %cst_21 {dimension_numbers = #tpu.dot_dimension_numbers<[1], [0], [0], [1], [0, 0, 1, 1], [], []>} : vector<2x32xf32>, vector<32x128xf32>, vector<2x128xf32> -> vector<2x128xf32>
    %95 = arith.addf %93, %94 : vector<2x128xf32>
    %96 = vector.extract_strided_slice %95 {offsets = [0, 0], sizes = [2, 32], strides = [1, 1]} : vector<2x128xf32> to vector<2x32xf32>
    %97 = arith.negf %96 : vector<2x32xf32>
    %98 = math.exp %97 : vector<2x32xf32>
    %cst_22 = arith.constant 1.000000e+00 : f32
    %99 = vector.broadcast %cst_22 : f32 to vector<2x32xf32>
    %100 = arith.addf %99, %98 : vector<2x32xf32>
    %101 = arith.divf %99, %100 : vector<2x32xf32>
    %102 = vector.extract_strided_slice %95 {offsets = [0, 32], sizes = [2, 32], strides = [1, 1]} : vector<2x128xf32> to vector<2x32xf32>
    %103 = arith.negf %102 : vector<2x32xf32>
    %104 = math.exp %103 : vector<2x32xf32>
    %cst_23 = arith.constant 1.000000e+00 : f32
    %105 = vector.broadcast %cst_23 : f32 to vector<2x32xf32>
    %106 = arith.addf %105, %104 : vector<2x32xf32>
    %107 = arith.divf %105, %106 : vector<2x32xf32>
    %108 = vector.extract_strided_slice %95 {offsets = [0, 64], sizes = [2, 32], strides = [1, 1]} : vector<2x128xf32> to vector<2x32xf32>
    %109 = math.tanh %108 : vector<2x32xf32>
    %110 = vector.extract_strided_slice %95 {offsets = [0, 96], sizes = [2, 32], strides = [1, 1]} : vector<2x128xf32> to vector<2x32xf32>
    %111 = arith.negf %110 : vector<2x32xf32>
    %112 = math.exp %111 : vector<2x32xf32>
    %cst_24 = arith.constant 1.000000e+00 : f32
    %113 = vector.broadcast %cst_24 : f32 to vector<2x32xf32>
    %114 = arith.addf %113, %112 : vector<2x32xf32>
    %115 = arith.divf %113, %114 : vector<2x32xf32>
    %116 = arith.mulf %107, %90 : vector<2x32xf32>
    %117 = arith.mulf %101, %109 : vector<2x32xf32>
    %118 = arith.addf %116, %117 : vector<2x32xf32>
    %119 = math.tanh %118 : vector<2x32xf32>
    %120 = arith.mulf %115, %119 : vector<2x32xf32>
    %121 = vector.extract_strided_slice %5 {offsets = [8, 0], sizes = [2, 128], strides = [1, 1]} : vector<16x128xf32> to vector<2x128xf32>
    %cst_25 = arith.constant dense<0.000000e+00> : vector<2x128xf32>
    %122 = tpu.matmul %120, %6, %cst_25 {dimension_numbers = #tpu.dot_dimension_numbers<[1], [0], [0], [1], [0, 0, 1, 1], [], []>} : vector<2x32xf32>, vector<32x128xf32>, vector<2x128xf32> -> vector<2x128xf32>
    %123 = arith.addf %121, %122 : vector<2x128xf32>
    %124 = vector.extract_strided_slice %123 {offsets = [0, 0], sizes = [2, 32], strides = [1, 1]} : vector<2x128xf32> to vector<2x32xf32>
    %125 = arith.negf %124 : vector<2x32xf32>
    %126 = math.exp %125 : vector<2x32xf32>
    %cst_26 = arith.constant 1.000000e+00 : f32
    %127 = vector.broadcast %cst_26 : f32 to vector<2x32xf32>
    %128 = arith.addf %127, %126 : vector<2x32xf32>
    %129 = arith.divf %127, %128 : vector<2x32xf32>
    %130 = vector.extract_strided_slice %123 {offsets = [0, 32], sizes = [2, 32], strides = [1, 1]} : vector<2x128xf32> to vector<2x32xf32>
    %131 = arith.negf %130 : vector<2x32xf32>
    %132 = math.exp %131 : vector<2x32xf32>
    %cst_27 = arith.constant 1.000000e+00 : f32
    %133 = vector.broadcast %cst_27 : f32 to vector<2x32xf32>
    %134 = arith.addf %133, %132 : vector<2x32xf32>
    %135 = arith.divf %133, %134 : vector<2x32xf32>
    %136 = vector.extract_strided_slice %123 {offsets = [0, 64], sizes = [2, 32], strides = [1, 1]} : vector<2x128xf32> to vector<2x32xf32>
    %137 = math.tanh %136 : vector<2x32xf32>
    %138 = vector.extract_strided_slice %123 {offsets = [0, 96], sizes = [2, 32], strides = [1, 1]} : vector<2x128xf32> to vector<2x32xf32>
    %139 = arith.negf %138 : vector<2x32xf32>
    %140 = math.exp %139 : vector<2x32xf32>
    %cst_28 = arith.constant 1.000000e+00 : f32
    %141 = vector.broadcast %cst_28 : f32 to vector<2x32xf32>
    %142 = arith.addf %141, %140 : vector<2x32xf32>
    %143 = arith.divf %141, %142 : vector<2x32xf32>
    %144 = arith.mulf %135, %118 : vector<2x32xf32>
    %145 = arith.mulf %129, %137 : vector<2x32xf32>
    %146 = arith.addf %144, %145 : vector<2x32xf32>
    %147 = math.tanh %146 : vector<2x32xf32>
    %148 = arith.mulf %143, %147 : vector<2x32xf32>
    %149 = vector.extract_strided_slice %5 {offsets = [10, 0], sizes = [2, 128], strides = [1, 1]} : vector<16x128xf32> to vector<2x128xf32>
    %cst_29 = arith.constant dense<0.000000e+00> : vector<2x128xf32>
    %150 = tpu.matmul %148, %6, %cst_29 {dimension_numbers = #tpu.dot_dimension_numbers<[1], [0], [0], [1], [0, 0, 1, 1], [], []>} : vector<2x32xf32>, vector<32x128xf32>, vector<2x128xf32> -> vector<2x128xf32>
    %151 = arith.addf %149, %150 : vector<2x128xf32>
    %152 = vector.extract_strided_slice %151 {offsets = [0, 0], sizes = [2, 32], strides = [1, 1]} : vector<2x128xf32> to vector<2x32xf32>
    %153 = arith.negf %152 : vector<2x32xf32>
    %154 = math.exp %153 : vector<2x32xf32>
    %cst_30 = arith.constant 1.000000e+00 : f32
    %155 = vector.broadcast %cst_30 : f32 to vector<2x32xf32>
    %156 = arith.addf %155, %154 : vector<2x32xf32>
    %157 = arith.divf %155, %156 : vector<2x32xf32>
    %158 = vector.extract_strided_slice %151 {offsets = [0, 32], sizes = [2, 32], strides = [1, 1]} : vector<2x128xf32> to vector<2x32xf32>
    %159 = arith.negf %158 : vector<2x32xf32>
    %160 = math.exp %159 : vector<2x32xf32>
    %cst_31 = arith.constant 1.000000e+00 : f32
    %161 = vector.broadcast %cst_31 : f32 to vector<2x32xf32>
    %162 = arith.addf %161, %160 : vector<2x32xf32>
    %163 = arith.divf %161, %162 : vector<2x32xf32>
    %164 = vector.extract_strided_slice %151 {offsets = [0, 64], sizes = [2, 32], strides = [1, 1]} : vector<2x128xf32> to vector<2x32xf32>
    %165 = math.tanh %164 : vector<2x32xf32>
    %166 = vector.extract_strided_slice %151 {offsets = [0, 96], sizes = [2, 32], strides = [1, 1]} : vector<2x128xf32> to vector<2x32xf32>
    %167 = arith.negf %166 : vector<2x32xf32>
    %168 = math.exp %167 : vector<2x32xf32>
    %cst_32 = arith.constant 1.000000e+00 : f32
    %169 = vector.broadcast %cst_32 : f32 to vector<2x32xf32>
    %170 = arith.addf %169, %168 : vector<2x32xf32>
    %171 = arith.divf %169, %170 : vector<2x32xf32>
    %172 = arith.mulf %163, %146 : vector<2x32xf32>
    %173 = arith.mulf %157, %165 : vector<2x32xf32>
    %174 = arith.addf %172, %173 : vector<2x32xf32>
    %175 = math.tanh %174 : vector<2x32xf32>
    %176 = arith.mulf %171, %175 : vector<2x32xf32>
    %177 = vector.extract_strided_slice %5 {offsets = [12, 0], sizes = [2, 128], strides = [1, 1]} : vector<16x128xf32> to vector<2x128xf32>
    %cst_33 = arith.constant dense<0.000000e+00> : vector<2x128xf32>
    %178 = tpu.matmul %176, %6, %cst_33 {dimension_numbers = #tpu.dot_dimension_numbers<[1], [0], [0], [1], [0, 0, 1, 1], [], []>} : vector<2x32xf32>, vector<32x128xf32>, vector<2x128xf32> -> vector<2x128xf32>
    %179 = arith.addf %177, %178 : vector<2x128xf32>
    %180 = vector.extract_strided_slice %179 {offsets = [0, 0], sizes = [2, 32], strides = [1, 1]} : vector<2x128xf32> to vector<2x32xf32>
    %181 = arith.negf %180 : vector<2x32xf32>
    %182 = math.exp %181 : vector<2x32xf32>
    %cst_34 = arith.constant 1.000000e+00 : f32
    %183 = vector.broadcast %cst_34 : f32 to vector<2x32xf32>
    %184 = arith.addf %183, %182 : vector<2x32xf32>
    %185 = arith.divf %183, %184 : vector<2x32xf32>
    %186 = vector.extract_strided_slice %179 {offsets = [0, 32], sizes = [2, 32], strides = [1, 1]} : vector<2x128xf32> to vector<2x32xf32>
    %187 = arith.negf %186 : vector<2x32xf32>
    %188 = math.exp %187 : vector<2x32xf32>
    %cst_35 = arith.constant 1.000000e+00 : f32
    %189 = vector.broadcast %cst_35 : f32 to vector<2x32xf32>
    %190 = arith.addf %189, %188 : vector<2x32xf32>
    %191 = arith.divf %189, %190 : vector<2x32xf32>
    %192 = vector.extract_strided_slice %179 {offsets = [0, 64], sizes = [2, 32], strides = [1, 1]} : vector<2x128xf32> to vector<2x32xf32>
    %193 = math.tanh %192 : vector<2x32xf32>
    %194 = vector.extract_strided_slice %179 {offsets = [0, 96], sizes = [2, 32], strides = [1, 1]} : vector<2x128xf32> to vector<2x32xf32>
    %195 = arith.negf %194 : vector<2x32xf32>
    %196 = math.exp %195 : vector<2x32xf32>
    %cst_36 = arith.constant 1.000000e+00 : f32
    %197 = vector.broadcast %cst_36 : f32 to vector<2x32xf32>
    %198 = arith.addf %197, %196 : vector<2x32xf32>
    %199 = arith.divf %197, %198 : vector<2x32xf32>
    %200 = arith.mulf %191, %174 : vector<2x32xf32>
    %201 = arith.mulf %185, %193 : vector<2x32xf32>
    %202 = arith.addf %200, %201 : vector<2x32xf32>
    %203 = math.tanh %202 : vector<2x32xf32>
    %204 = arith.mulf %199, %203 : vector<2x32xf32>
    %205 = vector.extract_strided_slice %5 {offsets = [14, 0], sizes = [2, 128], strides = [1, 1]} : vector<16x128xf32> to vector<2x128xf32>
    %cst_37 = arith.constant dense<0.000000e+00> : vector<2x128xf32>
    %206 = tpu.matmul %204, %6, %cst_37 {dimension_numbers = #tpu.dot_dimension_numbers<[1], [0], [0], [1], [0, 0, 1, 1], [], []>} : vector<2x32xf32>, vector<32x128xf32>, vector<2x128xf32> -> vector<2x128xf32>
    %207 = arith.addf %205, %206 : vector<2x128xf32>
    %208 = vector.extract_strided_slice %207 {offsets = [0, 0], sizes = [2, 32], strides = [1, 1]} : vector<2x128xf32> to vector<2x32xf32>
    %209 = arith.negf %208 : vector<2x32xf32>
    %210 = math.exp %209 : vector<2x32xf32>
    %cst_38 = arith.constant 1.000000e+00 : f32
    %211 = vector.broadcast %cst_38 : f32 to vector<2x32xf32>
    %212 = arith.addf %211, %210 : vector<2x32xf32>
    %213 = arith.divf %211, %212 : vector<2x32xf32>
    %214 = vector.extract_strided_slice %207 {offsets = [0, 32], sizes = [2, 32], strides = [1, 1]} : vector<2x128xf32> to vector<2x32xf32>
    %215 = arith.negf %214 : vector<2x32xf32>
    %216 = math.exp %215 : vector<2x32xf32>
    %cst_39 = arith.constant 1.000000e+00 : f32
    %217 = vector.broadcast %cst_39 : f32 to vector<2x32xf32>
    %218 = arith.addf %217, %216 : vector<2x32xf32>
    %219 = arith.divf %217, %218 : vector<2x32xf32>
    %220 = vector.extract_strided_slice %207 {offsets = [0, 64], sizes = [2, 32], strides = [1, 1]} : vector<2x128xf32> to vector<2x32xf32>
    %221 = math.tanh %220 : vector<2x32xf32>
    %222 = vector.extract_strided_slice %207 {offsets = [0, 96], sizes = [2, 32], strides = [1, 1]} : vector<2x128xf32> to vector<2x32xf32>
    %223 = arith.negf %222 : vector<2x32xf32>
    %224 = math.exp %223 : vector<2x32xf32>
    %cst_40 = arith.constant 1.000000e+00 : f32
    %225 = vector.broadcast %cst_40 : f32 to vector<2x32xf32>
    %226 = arith.addf %225, %224 : vector<2x32xf32>
    %227 = arith.divf %225, %226 : vector<2x32xf32>
    %228 = arith.mulf %219, %202 : vector<2x32xf32>
    %229 = arith.mulf %213, %221 : vector<2x32xf32>
    %230 = arith.addf %228, %229 : vector<2x32xf32>
    %231 = math.tanh %230 : vector<2x32xf32>
    %232 = arith.mulf %227, %231 : vector<2x32xf32>
    %c0_41 = arith.constant 0 : index
    %c0_42 = arith.constant 0 : index
    %233 = vector.load %arg5[%c0_41, %c0_42] : memref<32x128xf32, #tpu.memory_space<vmem>>, vector<32x128xf32>
    %cst_43 = arith.constant dense<0.000000e+00> : vector<2x128xf32>
    %234 = tpu.matmul %232, %233, %cst_43 {dimension_numbers = #tpu.dot_dimension_numbers<[1], [0], [0], [1], [0, 0, 1, 1], [], []>} : vector<2x32xf32>, vector<32x128xf32>, vector<2x128xf32> -> vector<2x128xf32>
    %c0_44 = arith.constant 0 : index
    %c0_45 = arith.constant 0 : index
    %235 = vector.load %arg1[%c0_44, %c0_45] : memref<2x2xf32, #tpu.memory_space<vmem>>, vector<2x2xf32>
    %c0_46 = arith.constant 0 : index
    %c0_47 = arith.constant 0 : index
    %236 = vector.load %arg6[%c0_46, %c0_47] : memref<2x128xf32, #tpu.memory_space<vmem>>, vector<2x128xf32>
    %cst_48 = arith.constant dense<0.000000e+00> : vector<2x128xf32>
    %237 = tpu.matmul %235, %236, %cst_48 {dimension_numbers = #tpu.dot_dimension_numbers<[1], [0], [0], [1], [0, 0, 1, 1], [], []>} : vector<2x2xf32>, vector<2x128xf32>, vector<2x128xf32> -> vector<2x128xf32>
    %238 = arith.addf %234, %237 : vector<2x128xf32>
    %c0_49 = arith.constant 0 : index
    %c0_50 = arith.constant 0 : index
    %239 = vector.load %arg7[%c0_49, %c0_50] : memref<1x128xf32, #tpu.memory_space<vmem>>, vector<1x128xf32>
    %240 = vector.broadcast %239 : vector<1x128xf32> to vector<2x128xf32>
    %241 = arith.addf %238, %240 : vector<2x128xf32>
    %c0_51 = arith.constant 0 : index
    %c0_52 = arith.constant 0 : index
    %242 = vector.load %arg8[%c0_51, %c0_52] : memref<2x128xf32, #tpu.memory_space<vmem>>, vector<2x128xf32>
    tpu.vector_store %arg8[%c0_51, %c0_52], %241 {strides = array<i32>} : memref<2x128xf32, #tpu.memory_space<vmem>>, vector<2x128xf32>,
    return
  }
}

</mosaic_0001>

<bundles_post_ra>
// kernel: my_model_forward.1
= control target key start
LH: loop header
LB: loop body
LE: loop exit
PB: predicated region body
PF: predicated region fallthrough
CT: control target
= control target key end

     0   :  { %vm47_vm0 = vcmask 1043456   ;;  %vm40_vm1 = vcmask 31744   ;;  %v1486_v8 = vmov 0.0|0.0   ;;  %s1706_s0 = inlined_call_operand.vmem [shape: f32[16,4], index: 0, kind: input, shape index: {}]   ;;  %s1707_s1 = inlined_call_operand.vmem [shape: f32[2,2], index: 1, kind: input, shape index: {}]   ;;  %s1708_s2 = inlined_call_operand.vmem [shape: f32[4,128], index: 2, kind: input, shape index: {}]   ;;  %s1709_s3 = inlined_call_operand.vmem [shape: f32[32,128], index: 3, kind: input, shape index: {}]   ;;  %s1710_s4 = inlined_call_operand.vmem [shape: f32[1,128], index: 4, kind: input, shape index: {}]   ;;  %s1711_s5 = inlined_call_operand.vmem [shape: f32[32,128], index: 5, kind: input, shape index: {}]   ;;  %s1712_s6 = inlined_call_operand.vmem [shape: f32[2,128], index: 6, kind: input, shape index: {}]   ;;  %s1713_s7 = inlined_call_operand.vmem [shape: f32[1,128], index: 7, kind: input, shape index: {}]   ;;  %s1714_s8 = inlined_call_operand.hbm [shape: f32[2,128], index: 8, kind: output, shape index: {}]  }
   0x1   :  { %v32_v0 = vld [vmem:[%s1708_s2] sm:$0xf]  ;;  %v31_v2 = vld [vmem:[%s1706_s0 + $0x8] sm:$0xff]  ;;  %v128_v5 = vld [vmem:[%s1709_s3 + $0x10] sm:$0xff]  ;;  %1344 = vmatprep.subr.bf16.mxu0 %v1486_v8 }
   0x2   :  { %v30_v1 = vld [vmem:[%s1706_s0] sm:$0xff]  ;;  %1229 = vmatprep.subr.msk.mxu1 %vm47_vm0, %v32_v0  ;;  %v127_v4 = vld [vmem:[%s1709_s3 + $0x8] sm:$0xff]  ;;  %v129_v7 = vld [vmem:[%s1709_s3 + $0x18] sm:$0xff] }
   0x3   :  { %1231 = vmatprep.mubr.msk.f32.mxu1 %vm40_vm1, %v30_v1  ;;  %v126_v3 = vld [vmem:[%s1709_s3] sm:$0xff]  ;;  %1230 = vmatpush3.msk.msra.mxu1 %vm47_vm0, %v32_v0 }
   0x4   :  { %v1555_v6 = vpack.c.bf16 %v127_v4, %v126_v3 }
   0x5   :  { %13 = vsyncpa [#allocation3], 0  ;;  %1232 = vmatmul.mubr.msk.f32.vlgmr.msra.gmra.mrb[0].mxu1 %vm40_vm1, %v31_v2  ;;  %1338 = vmatprep.subr.bf16.mxu1 %v1486_v8  ;;  %v1563_v9 = vpack.c.bf16 %v129_v7, %v128_v5  ;;  %vm1487_vm2 = vmmov 0   ;;  %v1488_v10 = vmov 0.0   ;;  %v1156_v11 = vld [vmem:[%s1710_s4] ss:$0 sm:$0xff] }
   0x6   :  { %1340 = vmatpush3.bf16.msra.mxu1 %v1555_v6  ;;  %1242 = vmatprep.mubr.msk.f32.mxu1 %vm1487_vm2, %v1488_v10  ;;  %s1489_s18 = smov 64   ;;  %s1490_s4 = smov 32   ;;  %vm130_vm3 = vcmask 261120   ;;  %vm983_vm4 = vcmask 1041408   ;;  %vm979_vm5 = vcmask 15360  }
   0x7   :  { %1341 = vmatprep.subr.bf16.mxu1 %v1486_v8  ;;  %1346 = vmatpush3.bf16.msra.mxu0 %v1555_v6 }
   0x8   :  { %1347 = vmatprep.subr.bf16.mxu0 %v1486_v8  ;;  %1253 = vmatprep.mubr.msk.f32.mxu0 %vm1487_vm2, %v1488_v10 }
   0xa   :  { %1343 = vmatpush3.bf16.msra.mxu1 %v1563_v9 }
   0xb   :  { %1349 = vmatpush3.bf16.msra.mxu0 %v1563_v9  ;;  %1350 = vmatprep.subr.bf16.mxu1 %v1486_v8 }
   0xc   :  { %1356 = vmatprep.subr.bf16.mxu0 %v1486_v8 }
   0xd   :  { %1243 = vmatmul.mubr.f32.vlgmr.msra.gmra.mrb[2].mxu1 %v1488_v10 }
   0xe   :  { %1352 = vmatpush3.bf16.msra.mxu1 %v1555_v6  ;;  %1264 = vmatprep.mubr.msk.f32.mxu1 %vm1487_vm2, %v1488_v10 }
   0xf   :  { %1353 = vmatprep.subr.bf16.mxu1 %v1486_v8 }
  0x12   :  { %1355 = vmatpush3.bf16.msra.mxu1 %v1563_v9 }
  0x13   :  { %1362 = vmatprep.subr.bf16.mxu1 %v1486_v8 }
  0xd8   :  { %v1233_v12 = vpop.f32.mrb[0].mxu1 }
  0xd9   :  { %v1586_v13 = vadd.f32 %v1233_v12, %v1156_v11  ;;  %v117_v14 = vpop.f32.mrb[1].mxu1 }
  0xda   :  { %v1588_v15 = vadd.f32 %v1156_v11, %v117_v14 }
  0xe0   :  { %v200_v16 = vpop.f32.mrb[2].mxu1 }
  0xe1   :  { %v204_v17 = vadd.f32 %v200_v16, %v1588_v15  ;;  %v1244_v18 = vpop.f32.mrb[3].mxu1 }
  0xe3   :  { %1398 = vtanh.f32 %v204_v17  ;;  %v1160_v20 = vmul.f32 -1.442695, %v204_v17 }
  0xe5   :  { %1400 = vpow2.f32 %v1160_v20 }
  0xed   :  { %v1399_v19 = vpop.eup %1398 }
  0xee   :  { %214 = vrot.lane.b32.xlu0 %v1399_v19, %s1489_s18 }
  0xef   :  { %v1401_v21 = vpop.eup %1400 }
  0xf0   :  { %v208_v22 = vadd.f32 1.0, %v1401_v21 }
  0xf2   :  { %1402 = vrcp.f32 %v208_v22 }
  0xfc   :  { %v1403_v23 = vpop.eup %1402 }
  0xfd   :  { %v212_v26 = vmul.f32 0.0, %v1403_v23 }
 0x160   :  { %v215_v24 = vpop.permute.xlu0 %214 }
 0x161   :  { %v217_v25 = vmul.f32 %v1403_v23, %v215_v24 }
 0x163   :  { %219 = vrot.lane.b32.xlu0 %v217_v25, %s1490_s4 }
 0x1d5   :  { %v220_v27 = vpop.permute.xlu0 %219 }
 0x1d6   :  { %v222_v28 = vadd.f32 %v220_v27, %v212_v26 }
 0x1d8   :  { %1404 = vtanh.f32 %v222_v28  ;;  %v316_v44 = vrot.slane %v222_v28, 6 }
 0x1e2   :  { %v1405_v29 = vpop.eup %1404 }
 0x1e3   :  { %225 = vrot.lane.b32.xlu1 %v1405_v29, %s1489_s18 }
 0x255   :  { %v226_v30 = vpop.permute.xlu1 %225 }
 0x256   :  { %v228_v31 = vmul.f32 %v1403_v23, %v226_v30 }
 0x258   :  { %230 = vrot.lane.b32.xlu1 %v228_v31, %s1490_s4 }
 0x2ca   :  { %v231_v32 = vpop.permute.xlu1 %230 }
 0x2cb   :  { %1254 = vmatmul.mubr.msk.f32.vlgmr.msra.gmra.mrb[0].mxu0 %vm130_vm3, %v231_v32 }
 0x2cc   :  { %1358 = vmatpush3.bf16.msra.mxu0 %v1555_v6  ;;  %1275 = vmatprep.mubr.msk.f32.mxu0 %vm1487_vm2, %v1488_v10 }
 0x2cd   :  { %1359 = vmatprep.subr.bf16.mxu0 %v1486_v8 }
 0x2d0   :  { %1361 = vmatpush3.bf16.msra.mxu0 %v1563_v9 }
 0x2d1   :  { %1368 = vmatprep.subr.bf16.mxu0 %v1486_v8 }
 0x39e   :  { %v300_v33 = vpop.f32.mrb[0].mxu0 }
 0x39f   :  { %v305_v34 = vrot.slane %v300_v33, 6  ;;  %v1255_v35 = vpop.f32.mrb[1].mxu0 }
 0x3a1   :  { %v307_v36 = vadd.f32 %v305_v34, %v1588_v15 }
 0x3a3   :  { %1406 = vtanh.f32 %v307_v36  ;;  %v1162_v38 = vmul.f32 -1.442695, %v307_v36 }
 0x3a5   :  { %1408 = vpow2.f32 %v1162_v38 }
 0x3ad   :  { %v1407_v37 = vpop.eup %1406 }
 0x3ae   :  { %320 = vrot.lane.b32.xlu0 %v1407_v37, %s1489_s18 }
 0x3af   :  { %v1409_v39 = vpop.eup %1408 }
 0x3b0   :  { %v311_v40 = vadd.f32 1.0, %v1409_v39 }
 0x3b2   :  { %1410 = vrcp.f32 %v311_v40 }
 0x3bc   :  { %v1411_v41 = vpop.eup %1410 }
 0x3bd   :  { %v318_v45 = vmul.f32 %v1411_v41, %v316_v44 }
 0x420   :  { %v321_v42 = vpop.permute.xlu0 %320 }
 0x421   :  { %v323_v43 = vmul.f32 %v1411_v41, %v321_v42 }
 0x423   :  { %325 = vrot.lane.b32.xlu1 %v323_v43, %s1490_s4 }
 0x495   :  { %v326_v46 = vpop.permute.xlu1 %325 }
 0x496   :  { %v328_v47 = vadd.f32 %v326_v46, %v318_v45 }
 0x498   :  { %1412 = vtanh.f32 %v328_v47  ;;  %v423_v0 = vrot.slane %v328_v47, 6 }
 0x4a2   :  { %v1413_v48 = vpop.eup %1412 }
 0x4a3   :  { %331 = vrot.lane.b32.xlu0 %v1413_v48, %s1489_s18 }
 0x515   :  { %v332_v49 = vpop.permute.xlu0 %331 }
 0x516   :  { %v334_v50 = vmul.f32 %v1411_v41, %v332_v49 }
 0x518   :  { %v336_v51 = vrot.slane %v334_v50, 2 }
 0x51a   :  { %337 = vrot.lane.b32.xlu1 %v336_v51, %s1490_s4 }
 0x58c   :  { %v338_v52 = vpop.permute.xlu1 %337 }
 0x58d   :  { %1265 = vmatmul.mubr.msk.f32.vlgmr.msra.gmra.mrb[4].mxu1 %vm130_vm3, %v338_v52 }
 0x58e   :  { %1364 = vmatpush3.bf16.msra.mxu1 %v1555_v6  ;;  %1286 = vmatprep.mubr.msk.f32.mxu1 %vm1487_vm2, %v1488_v10 }
 0x58f   :  { %1365 = vmatprep.subr.bf16.mxu1 %v1486_v8 }
 0x592   :  { %1367 = vmatpush3.bf16.msra.mxu1 %v1563_v9 }
 0x593   :  { %1374 = vmatprep.subr.bf16.mxu1 %v1486_v8 }
 0x660   :  { %v407_v53 = vpop.f32.mrb[4].mxu1 }
 0x661   :  { %v412_v54 = vrot.slane %v407_v53, 4  ;;  %v1266_v55 = vpop.f32.mrb[5].mxu1 }
 0x663   :  { %v414_v56 = vadd.f32 %v412_v54, %v1588_v15 }
 0x665   :  { %1414 = vtanh.f32 %v414_v56  ;;  %v1164_v58 = vmul.f32 -1.442695, %v414_v56 }
 0x667   :  { %1416 = vpow2.f32 %v1164_v58 }
 0x66f   :  { %v1415_v57 = vpop.eup %1414 }
 0x670   :  { %427 = vrot.lane.b32.xlu0 %v1415_v57, %s1489_s18 }
 0x671   :  { %v1417_v59 = vpop.eup %1416 }
 0x672   :  { %v418_v60 = vadd.f32 1.0, %v1417_v59 }
 0x674   :  { %1418 = vrcp.f32 %v418_v60 }
 0x67e   :  { %v1419_v61 = vpop.eup %1418 }
 0x67f   :  { %v425_v1 = vmul.f32 %v1419_v61, %v423_v0 }
 0x6e2   :  { %v428_v62 = vpop.permute.xlu0 %427 }
 0x6e3   :  { %v430_v63 = vmul.f32 %v1419_v61, %v428_v62 }
 0x6e5   :  { %432 = vrot.lane.b32.xlu1 %v430_v63, %s1490_s4 }
 0x757   :  { %v433_v2 = vpop.permute.xlu1 %432 }
 0x758   :  { %v435_v3 = vadd.f32 %v433_v2, %v425_v1 }
 0x75a   :  { %1420 = vtanh.f32 %v435_v3  ;;  %v530_v26 = vrot.slane %v435_v3, 6 }
 0x764   :  { %v1421_v4 = vpop.eup %1420 }
 0x765   :  { %438 = vrot.lane.b32.xlu0 %v1421_v4, %s1489_s18 }
 0x7d7   :  { %v439_v5 = vpop.permute.xlu0 %438 }
 0x7d8   :  { %v441_v7 = vmul.f32 %v1419_v61, %v439_v5 }
 0x7da   :  { %v443_v11 = vrot.slane %v441_v7, 4 }
 0x7dc   :  { %444 = vrot.lane.b32.xlu1 %v443_v11, %s1490_s4 }
 0x84e   :  { %v445_v12 = vpop.permute.xlu1 %444 }
 0x84f   :  { %1276 = vmatmul.mubr.msk.f32.vlgmr.msra.gmra.mrb[2].mxu0 %vm130_vm3, %v445_v12 }
 0x850   :  { %1370 = vmatpush3.bf16.msra.mxu0 %v1555_v6  ;;  %1297 = vmatprep.mubr.msk.f32.mxu0 %vm1487_vm2, %v1488_v10 }
 0x851   :  { %1371 = vmatprep.subr.bf16.mxu0 %v1486_v8 }
 0x854   :  { %1373 = vmatpush3.bf16.msra.mxu0 %v1563_v9 }
 0x855   :  { %1380 = vmatprep.subr.bf16.mxu0 %v1486_v8 }
 0x922   :  { %v514_v14 = vpop.f32.mrb[2].mxu0 }
 0x923   :  { %v519_v16 = vrot.slane %v514_v14, 2  ;;  %v1277_v17 = vpop.f32.mrb[3].mxu0 }
 0x925   :  { %v521_v18 = vadd.f32 %v519_v16, %v1588_v15 }
 0x927   :  { %1422 = vtanh.f32 %v521_v18  ;;  %v1166_v20 = vmul.f32 -1.442695, %v521_v18 }
 0x929   :  { %1424 = vpow2.f32 %v1166_v20 }
 0x931   :  { %v1423_v19 = vpop.eup %1422 }
 0x932   :  { %534 = vrot.lane.b32.xlu0 %v1423_v19, %s1489_s18 }
 0x933   :  { %v1425_v21 = vpop.eup %1424 }
 0x934   :  { %v525_v22 = vadd.f32 1.0, %v1425_v21 }
 0x936   :  { %1426 = vrcp.f32 %v525_v22 }
 0x940   :  { %v1427_v23 = vpop.eup %1426 }
 0x941   :  { %v532_v27 = vmul.f32 %v1427_v23, %v530_v26 }
 0x9a4   :  { %v535_v24 = vpop.permute.xlu0 %534 }
 0x9a5   :  { %v537_v25 = vmul.f32 %v1427_v23, %v535_v24 }
 0x9a7   :  { %539 = vrot.lane.b32.xlu1 %v537_v25, %s1490_s4 }
 0xa19   :  { %v540_v28 = vpop.permute.xlu1 %539 }
 0xa1a   :  { %v542_v29 = vadd.f32 %v540_v28, %v532_v27 }
 0xa1c   :  { %1428 = vtanh.f32 %v542_v29  ;;  %v634_v44 = vrot.slane %v542_v29, 6 }
 0xa26   :  { %v1429_v15 = vpop.eup %1428 }
 0xa27   :  { %545 = vrot.lane.b32.xlu0 %v1429_v15, %s1489_s18 }
 0xa99   :  { %v546_v30 = vpop.permute.xlu0 %545 }
 0xa9a   :  { %v548_v31 = vmul.f32 %v1427_v23, %v546_v30 }
 0xa9c   :  { %v550_v32 = vrot.slane %v548_v31, 6 }
 0xa9e   :  { %551 = vrot.lane.b32.xlu1 %v550_v32, %s1490_s4 }
 0xb10   :  { %v552_v33 = vpop.permute.xlu1 %551 }
 0xb11   :  { %1287 = vmatmul.mubr.msk.f32.vlgmr.msra.gmra.mrb[6].mxu1 %vm130_vm3, %v552_v33 }
 0xb12   :  { %1376 = vmatpush3.bf16.msra.mxu1 %v1555_v6  ;;  %1308 = vmatprep.mubr.msk.f32.mxu1 %vm1487_vm2, %v1488_v10 }
 0xb13   :  { %1377 = vmatprep.subr.bf16.mxu1 %v1486_v8 }
 0xb16   :  { %1379 = vmatpush3.bf16.msra.mxu1 %v1563_v9 }
 0xb17   :  { %1322 = vmatprep.subr.mxu1 %v1488_v10 }
 0xbe4   :  { %v621_v34 = vpop.f32.mrb[6].mxu1 }
 0xbe5   :  { %v625_v35 = vadd.f32 %v621_v34, %v1586_v13  ;;  %v1288_v36 = vpop.f32.mrb[7].mxu1 }
 0xbe7   :  { %1430 = vtanh.f32 %v625_v35  ;;  %v1168_v38 = vmul.f32 -1.442695, %v625_v35 }
 0xbe9   :  { %1432 = vpow2.f32 %v1168_v38 }
 0xbf1   :  { %v1431_v37 = vpop.eup %1430 }
 0xbf2   :  { %638 = vrot.lane.b32.xlu0 %v1431_v37, %s1489_s18 }
 0xbf3   :  { %v1433_v39 = vpop.eup %1432 }
 0xbf4   :  { %v629_v40 = vadd.f32 1.0, %v1433_v39 }
 0xbf6   :  { %1434 = vrcp.f32 %v629_v40 }
 0xc00   :  { %v1435_v41 = vpop.eup %1434 }
 0xc01   :  { %v636_v45 = vmul.f32 %v1435_v41, %v634_v44 }
 0xc64   :  { %v639_v42 = vpop.permute.xlu0 %638 }
 0xc65   :  { %v641_v43 = vmul.f32 %v1435_v41, %v639_v42 }
 0xc67   :  { %643 = vrot.lane.b32.xlu1 %v641_v43, %s1490_s4 }
 0xcd9   :  { %v644_v46 = vpop.permute.xlu1 %643 }
 0xcda   :  { %v646_v47 = vadd.f32 %v644_v46, %v636_v45  ;;  %v974_v45 = vld [vmem:[%s1711_s5 + $0x8] sm:$0xff]  ;;  %v978_v46 = vld [vmem:[%s1712_s6] sm:$0x3]  ;;  %s1491_s6 = smov [#allocation2]  }
 0xcdb   :  { %s1148_s9 = sshll.u32 %s1491_s6, 4  ;;  %s1149_s9 = int_to_ptr.vmem [resolvable:$true] %s1148_s9 }
 0xcdc   :  { %1436 = vtanh.f32 %v646_v47  ;;  %s1462_s10 = scalar_lea.vmem %s1149_s9, 32  ;;  %p1467_p1 = scmp.lt.s32.totalorder %s1149_s9, %s1149_s9 }
 0xcdd   :  { %p1463_p0 = scmp.ne.s32.totalorder %s1149_s9, %s1462_s10  ;;  %p1468_p2 = scmp.lt.s32.totalorder %s1462_s10, %s1462_s10 }
 0xcdf   :  { %p1469_p3 = por %p1468_p2, %p1467_p1 }
 0xce1   :  { %p1470_p4 = pnand %p1469_p3, %p1463_p0 }
 0xce6   :  { %v1437_v48 = vpop.eup %1436 }
 0xce7   :  { %649 = vrot.lane.b32.xlu0 %v1437_v48, %s1489_s18  ;;  %v975_v48 = vld [vmem:[%s1711_s5 + $0x10] sm:$0xff] }
 0xd59   :  { %v650_v49 = vpop.permute.xlu0 %649 }
 0xd5a   :  { %v652_v50 = vmul.f32 %v1435_v41, %v650_v49  ;;  %v976_v49 = vld [vmem:[%s1711_s5 + $0x18] sm:$0xff] }
 0xd5c   :  { %654 = vrot.lane.b32.xlu1 %v652_v50, %s1490_s4  ;;  %v977_v50 = vld [vmem:[%s1707_s1] sm:$0x3] }
 0xdce   :  { %v655_v51 = vpop.permute.xlu1 %654 }
 0xdcf   :  { %1298 = vmatmul.mubr.msk.f32.vlgmr.msra.gmra.mrb[4].mxu0 %vm130_vm3, %v655_v51  ;;  %v1390_v51 = vpack.c.bf16 %v976_v49, %v975_v48 }
 0xdd0   :  { %1382 = vmatpush3.bf16.msra.mxu0 %v1555_v6  ;;  %1319 = vmatprep.mubr.msk.f32.mxu0 %vm1487_vm2, %v1488_v10 }
 0xdd1   :  { %1383 = vmatprep.subr.bf16.mxu0 %v1486_v8 }
 0xdd4   :  { %1385 = vmatpush3.bf16.msra.mxu0 %v1563_v9  ;;  %v740_v9 = vrot.slane %v646_v47, 6 }
 0xdd5   :  { %1386 = vmatprep.subr.bf16.mxu0 %v1486_v8 }
 0xea2   :  { %v724_v52 = vpop.f32.mrb[4].mxu0 }
 0xea3   :  { %v729_v53 = vrot.slane %v724_v52, 6  ;;  %v1299_v54 = vpop.f32.mrb[5].mxu0 }
 0xea5   :  { %v731_v55 = vadd.f32 %v729_v53, %v1586_v13 }
 0xea7   :  { %1438 = vtanh.f32 %v731_v55  ;;  %v1170_v57 = vmul.f32 -1.442695, %v731_v55 }
 0xea9   :  { %1440 = vpow2.f32 %v1170_v57 }
 0xeb1   :  { %v1439_v56 = vpop.eup %1438 }
 0xeb2   :  { %744 = vrot.lane.b32.xlu0 %v1439_v56, %s1489_s18 }
 0xeb3   :  { %v1441_v6 = vpop.eup %1440 }
 0xeb4   :  { %v735_v58 = vadd.f32 1.0, %v1441_v6 }
 0xeb6   :  { %1442 = vrcp.f32 %v735_v58 }
 0xec0   :  { %v1443_v59 = vpop.eup %1442 }
 0xec1   :  { %v742_v62 = vmul.f32 %v1443_v59, %v740_v9 }
 0xf24   :  { %v745_v60 = vpop.permute.xlu0 %744 }
 0xf25   :  { %v747_v61 = vmul.f32 %v1443_v59, %v745_v60 }
 0xf27   :  { %749 = vrot.lane.b32.xlu1 %v747_v61, %s1490_s4 }
 0xf99   :  { %v750_v63 = vpop.permute.xlu1 %749 }
 0xf9a   :  { %v752_v0 = vadd.f32 %v750_v63, %v742_v62 }
 0xf9c   :  { %1444 = vtanh.f32 %v752_v0  ;;  %v847_v23 = vrot.slane %v752_v0, 6 }
 0xfa6   :  { %v1445_v1 = vpop.eup %1444 }
 0xfa7   :  { %755 = vrot.lane.b32.xlu0 %v1445_v1, %s1489_s18 }
0x1019   :  { %v756_v2 = vpop.permute.xlu0 %755 }
0x101a   :  { %v758_v3 = vmul.f32 %v1443_v59, %v756_v2  ;;  %v1178_v59 = vld [vmem:[%s1713_s7] ss:$0 sm:$0xff] }
0x101c   :  { %v760_v4 = vrot.slane %v758_v3, 2 }
0x101e   :  { %761 = vrot.lane.b32.xlu1 %v760_v4, %s1490_s4 }
0x1090   :  { %v762_v5 = vpop.permute.xlu1 %761 }
0x1091   :  { %1309 = vmatmul.mubr.msk.f32.vlgmr.msra.gmra.mrb[8].mxu1 %vm130_vm3, %v762_v5 }
0x1092   :  { %1324 = vmatprep.mubr.msk.f32.mxu1 %vm1487_vm2, %v1488_v10  ;;  %1323 = vmatpush3.msk.msra.mxu1 %vm983_vm4, %v978_v46 }
0x1095   :  { %1325 = vmatmul.mubr.msk.f32.vlgmr.msra.gmra.mrb[10].mxu1 %vm979_vm5, %v977_v50 }
0x1164   :  { %v831_v7 = vpop.f32.mrb[8].mxu1 }
0x1165   :  { %v836_v11 = vrot.slane %v831_v7, 4  ;;  %v1310_v12 = vpop.f32.mrb[9].mxu1 }
0x1167   :  { %v838_v14 = vadd.f32 %v836_v11, %v1586_v13 }
0x1168   :  { %v1053_v56 = vpop.f32.mrb[10].mxu1 }
0x1169   :  { %1446 = vtanh.f32 %v838_v14  ;;  %v1172_v17 = vmul.f32 -1.442695, %v838_v14  ;;  %v1326_v57 = vpop.f32.mrb[11].mxu1 }
0x116b   :  { %1448 = vpow2.f32 %v1172_v17 }
0x1173   :  { %v1447_v16 = vpop.eup %1446 }
0x1174   :  { %851 = vrot.lane.b32.xlu0 %v1447_v16, %s1489_s18 }
0x1175   :  { %v1449_v18 = vpop.eup %1448 }
0x1176   :  { %v842_v19 = vadd.f32 1.0, %v1449_v18 }
0x1178   :  { %1450 = vrcp.f32 %v842_v19 }
0x1182   :  { %v1451_v20 = vpop.eup %1450 }
0x1183   :  { %v849_v24 = vmul.f32 %v1451_v20, %v847_v23 }
0x11e6   :  { %v852_v21 = vpop.permute.xlu0 %851 }
0x11e7   :  { %v854_v22 = vmul.f32 %v1451_v20, %v852_v21 }
0x11e9   :  { %856 = vrot.lane.b32.xlu1 %v854_v22, %s1490_s4 }
0x125b   :  { %v857_v25 = vpop.permute.xlu1 %856 }
0x125c   :  { %v859_v26 = vadd.f32 %v857_v25, %v849_v24 }
0x125e   :  { %1452 = vtanh.f32 %v859_v26 }
0x1268   :  { %v1453_v27 = vpop.eup %1452 }
0x1269   :  { %862 = vrot.lane.b32.xlu0 %v1453_v27, %s1489_s18 }
0x12db   :  { %v863_v28 = vpop.permute.xlu0 %862 }
0x12dc   :  { %v865_v29 = vmul.f32 %v1451_v20, %v863_v28 }
0x12de   :  { %v867_v15 = vrot.slane %v865_v29, 4 }
0x12e0   :  { %868 = vrot.lane.b32.xlu1 %v867_v15, %s1490_s4 }
0x1352   :  { %v869_v30 = vpop.permute.xlu1 %868 }
0x1353   :  { %1320 = vmatmul.mubr.msk.f32.vlgmr.msra.gmra.mrb[6].mxu0 %vm130_vm3, %v869_v30 }
0x1354   :  { %1335 = vmatprep.mubr.msk.f32.mxu0 %vm1487_vm2, %v1488_v10  ;;  %v954_v10 = vrot.slane %v859_v26, 6 }
0x1426   :  { %v938_v31 = vpop.f32.mrb[6].mxu0 }
0x1427   :  { %v943_v32 = vrot.slane %v938_v31, 2  ;;  %v1321_v33 = vpop.f32.mrb[7].mxu0 }
0x1429   :  { %v945_v34 = vadd.f32 %v943_v32, %v1586_v13  ;;  %v973_v13 = vld [vmem:[%s1711_s5] sm:$0xff] }
0x142a   :  { %v1387_v47 = vpack.c.bf16 %v974_v45, %v973_v13 }
0x142b   :  { %1454 = vtanh.f32 %v945_v34  ;;  %v1174_v36 = vmul.f32 -1.442695, %v945_v34 }
0x142c   :  { %1388 = vmatpush3.bf16.msra.mxu0 %v1387_v47 }
0x142d   :  { %1456 = vpow2.f32 %v1174_v36  ;;  %1389 = vmatprep.subr.bf16.mxu0 %v1486_v8 }
0x1430   :  { %1391 = vmatpush3.bf16.msra.mxu0 %v1390_v51 }
0x1435   :  { %v1455_v35 = vpop.eup %1454 }
0x1436   :  { %958 = vrot.lane.b32.xlu0 %v1455_v35, %s1489_s18 }
0x1437   :  { %v1457_v37 = vpop.eup %1456 }
0x1438   :  { %v949_v38 = vadd.f32 1.0, %v1457_v37 }
0x143a   :  { %1458 = vrcp.f32 %v949_v38 }
0x1444   :  { %v1459_v39 = vpop.eup %1458 }
0x1445   :  { %v956_v42 = vmul.f32 %v1459_v39, %v954_v10 }
0x14a8   :  { %v959_v40 = vpop.permute.xlu0 %958 }
0x14a9   :  { %v961_v41 = vmul.f32 %v1459_v39, %v959_v40 }
0x14ab   :  { %963 = vrot.lane.b32.xlu1 %v961_v41, %s1490_s4 }
0x151d   :  { %v964_v43 = vpop.permute.xlu1 %963 }
0x151e   :  { %v966_v44 = vadd.f32 %v964_v43, %v956_v42 }
0x1520   :  { %1460 = vtanh.f32 %v966_v44 }
0x152a   :  { %v1461_v52 = vpop.eup %1460 }
0x152b   :  { %969 = vrot.lane.b32.xlu0 %v1461_v52, %s1489_s18 }
0x159d   :  { %v970_v53 = vpop.permute.xlu0 %969 }
0x159e   :  { %v972_v54 = vmul.f32 %v1459_v39, %v970_v53 }
0x15a0   :  { %v1058_v55 = vrot.slane %v972_v54, 6 }
0x15a2   :  { %1059 = vrot.lane.b32.xlu1 %v1058_v55, %s1490_s4 }
0x1614   :  { %v1060_v6 = vpop.permute.xlu1 %1059 }
0x1615   :  { %1336 = vmatmul.mubr.msk.f32.vlgmr.msra.gmra.mrb[8].mxu0 %vm130_vm3, %v1060_v6 }
0x16e8   :  { %v1129_v58 = vpop.f32.mrb[8].mxu0 }
0x16e9   :  { %v1130_v8 = vadd.f32 %v1129_v58, %v1053_v56  ;;  %v1337_v60 = vpop.f32.mrb[9].mxu0 }
0x16eb   :  { %v1140_v61 = vadd.f32 %v1178_v59, %v1130_v8 }
0x16ed   :  { %1141 = vst [vmem:[#allocation2] sm:$0x3] %v1140_v61 }
0x16ee   :  { %1473 = shalt.err (!%p1470_p4)
}
0x16ef   :  { %s1474_s13 = scalar_lea.hbm %s1714_s8, 32 }
0x16f0   :  { %p1475_p5 = scmp.ne.s32.totalorder %s1714_s8, %s1474_s13  ;;  %p1478_p6 = scmp.lt.u32.totalorder %s1474_s13, %s1714_s8 }
0x16f2   :  { %p1480_p7 = pnand %p1478_p6, %p1475_p5 }
0x16f4   :  { %1483 = shalt.err (!%p1480_p7)
}
0x16f5   :  { %1151 = dma.vmem_to_hbm [thread:$0]  %s1149_s9, 32, %s1714_s8, [#allocation3]  }
0x16f6   :  { %1484 = dma.done.wait [#allocation3], 32  }
0x16f7   :  { %1485 = vsyncadd [#allocation3], 4294967264 }
0x16f8   :  { %1155 = vsyncpa [#allocation3], 1 }

</bundles_post_ra>
